<compile_context>
chip_gen: v7x
topology: tpu7x:2x2x1
jax: 0.10.0
libtpu: 0.0.40
codegen_flags: <defaults>
</compile_context>

<pallas_src>
import functools

import jax
import jax.numpy as jnp
import numpy as np
from jax.experimental import pallas as pl
from jax.experimental.pallas import tpu as pltpu

_LANE = 128   # TPU vreg lane width (last dim)
_SUB = 8      # TPU vreg sublane width (second-to-last dim)


def _round_up(x, m):
    return ((x + m - 1) // m) * m


def maml_forward_kernel(x_ref, w1_ref, b1_ref, w2_ref, b2_ref, wc_ref, bc_ref,
                        out_ref):
    """Fused backbone-MLP + classifier forward, whole (padded) batch at once."""
    h1 = jnp.dot(x_ref[...], w1_ref[...], preferred_element_type=jnp.float32)
    h1 = jnp.maximum(h1 + b1_ref[...], 0.0)                        # (Np, Hp)
    h2 = jnp.dot(h1, w2_ref[...], preferred_element_type=jnp.float32)
    h2 = jnp.maximum(h2 + b2_ref[...], 0.0)                        # (Np, Hp)
    scores = jnp.dot(h2, wc_ref[...], preferred_element_type=jnp.float32)
    out_ref[...] = scores + bc_ref[...]                            # (Np, 128)


@functools.partial(jax.jit, static_argnames=())
def _maml_forward_jit(x, params):
    N, F = x.shape
    H = params["w1"].shape[1]

    # Padded (TPU-aligned) sizes.
    Fp = _round_up(F, _LANE)
    Hp = _round_up(H, _LANE)
    Np = _round_up(N, _SUB)

    f32 = jnp.float32
    xp = jnp.zeros((Np, Fp), f32).at[:N, :F].set(x.astype(f32))
    w1p = jnp.zeros((Fp, Hp), f32).at[:F, :H].set(params["w1"].astype(f32))
    b1p = jnp.zeros((1, Hp), f32).at[:, :H].set(params["b1"].astype(f32))
    w2p = jnp.zeros((Hp, Hp), f32).at[:H, :H].set(params["w2"].astype(f32))
    b2p = jnp.zeros((1, Hp), f32).at[:, :H].set(params["b2"].astype(f32))
    # Classifier output padded to a full 128-lane slab -> unmasked stores.
    wcp = jnp.zeros((Hp, _LANE), f32).at[:H, :1].set(params["wc"].astype(f32))
    bcp = jnp.zeros((1, _LANE), f32).at[:, :1].set(params["bc"].astype(f32))

    flops = 2 * Np * (Fp * Hp + Hp * Hp + Hp * _LANE)
    bytes_accessed = 4 * (Np * Fp + Fp * Hp + Hp + Hp * Hp + Hp
                          + Hp * _LANE + _LANE + Np * _LANE)

    out = pl.pallas_call(
        maml_forward_kernel,
        out_shape=jax.ShapeDtypeStruct((Np, _LANE), f32),
        grid_spec=pltpu.PrefetchScalarGridSpec(
            num_scalar_prefetch=0,
            grid=(1,),  # whole padded batch fits in VMEM -> single grid step
            in_specs=[
                pl.BlockSpec((Np, Fp), lambda i: (0, 0)),      # x
                pl.BlockSpec((Fp, Hp), lambda i: (0, 0)),      # w1
                pl.BlockSpec((1, Hp), lambda i: (0, 0)),       # b1
                pl.BlockSpec((Hp, Hp), lambda i: (0, 0)),      # w2
                pl.BlockSpec((1, Hp), lambda i: (0, 0)),       # b2
                pl.BlockSpec((Hp, _LANE), lambda i: (0, 0)),   # wc (padded)
                pl.BlockSpec((1, _LANE), lambda i: (0, 0)),    # bc (padded)
            ],
            out_specs=pl.BlockSpec((Np, _LANE), lambda i: (0, 0)),
        ),
        compiler_params=pltpu.CompilerParams(
            dimension_semantics=("arbitrary",)),
        cost_estimate=pl.CostEstimate(
            flops=flops, transcendentals=0, bytes_accessed=bytes_accessed),
    )(xp, w1p, b1p, w2p, b2p, wcp, bcp)

    # Strip lane / batch padding: only column 0 and the first N rows are real.
    return out[:N, :1]


def maml_forward(x, params):
    """MAML forward (feature MLP + Linear classifier) as a Pallas kernel.

    x: [N, F] float32 (one task's support+query samples, flat features)
    params: dict with w1 [F,H], b1 [1,H], w2 [H,H], b2 [1,H], wc [H,1], bc [1,1]
    returns scores: [N, 1] float32 logits (same as the PyTorch forward()).
    """
    return _maml_forward_jit(x, params)


def init_params(key, n_feature, hidden):
    """Deterministic parameter init (uniform, PyTorch-Linear-like scaling)."""
    k1, k2, k3, k4, k5, k6 = jax.random.split(key, 6)

    def lin(kw, kb, fan_in, fan_out):
        bound = 1.0 / np.sqrt(fan_in)
        w = jax.random.uniform(kw, (fan_in, fan_out), jnp.float32, -bound, bound)
        b = jax.random.uniform(kb, (1, fan_out), jnp.float32, -bound, bound)
        return w, b

    w1, b1 = lin(k1, k2, n_feature, hidden)
    w2, b2 = lin(k3, k4, hidden, hidden)
    wc, bc = lin(k5, k6, hidden, 1)
    return {"w1": w1, "b1": b1, "w2": w2, "b2": b2, "wc": wc, "bc": bc}


def maml_forward_ref(x, p):
    """Pure-JAX reference of the same forward pass (for correctness check)."""
    h1 = jnp.maximum(x @ p["w1"] + p["b1"], 0.0)
    h2 = jnp.maximum(h1 @ p["w2"] + p["b2"], 0.0)
    return h2 @ p["wc"] + p["bc"]


if __name__ == "__main__":
    # Small shapes consistent with the module: flat feature vectors.
    N = 30          # n_support + n_query samples (no divisibility requirement)
    N_FEATURE = 16  # n_feature
    HIDDEN = 32     # backbone hidden width == final_feat_dim

    key = jax.random.PRNGKey(0)
    kx, kp = jax.random.split(key)
    x = jax.random.normal(kx, (N, N_FEATURE), jnp.float32)
    params = init_params(kp, N_FEATURE, HIDDEN)

    scores = maml_forward(x, params)
    scores = jax.block_until_ready(scores)

    ref = maml_forward_ref(x, params)
    np.testing.assert_allclose(np.asarray(scores), np.asarray(ref),
                               rtol=1e-5, atol=1e-5)

    # TODO(synk): set_forward's inner-loop adaptation (autograd + fast-weight
    # updates), BCEWithLogitsLoss, and the train/test loops are training-time
    # host procedures, not part of forward(); only forward() is a kernel.
    print("KERNEL_OK")
</pallas_src>

<mosaic_0001>
module attributes {stable_mosaic.version = 11 : i64} {
  func.func @maml_forward_kernel(%arg0: i32, %arg1: memref<32x128xf32, #tpu.memory_space<vmem>>, %arg2: memref<128x128xf32, #tpu.memory_space<vmem>>, %arg3: memref<1x128xf32, #tpu.memory_space<vmem>>, %arg4: memref<128x128xf32, #tpu.memory_space<vmem>>, %arg5: memref<1x128xf32, #tpu.memory_space<vmem>>, %arg6: memref<128x128xf32, #tpu.memory_space<vmem>>, %arg7: memref<1x128xf32, #tpu.memory_space<vmem>>, %arg8: memref<32x128xf32, #tpu.memory_space<vmem>>) attributes {dimension_semantics = [#tpu.dimension_semantics<arbitrary>], iteration_bounds = array<i64: 1>, scalar_prefetch = 0 : i64, scratch_operands = 0 : i64, tpu.core_type = #tpu.core_type<tc>, window_params = [{pipeline_mode = #tpu.pipeline_mode<synchronous>, transform_indices = @transform_0, window_bounds = array<i64: 32, 128>}, {pipeline_mode = #tpu.pipeline_mode<synchronous>, transform_indices = @transform_1, window_bounds = array<i64: 128, 128>}, {pipeline_mode = #tpu.pipeline_mode<synchronous>, transform_indices = @transform_2, window_bounds = array<i64: 1, 128>}, {pipeline_mode = #tpu.pipeline_mode<synchronous>, transform_indices = @transform_3, window_bounds = array<i64: 128, 128>}, {pipeline_mode = #tpu.pipeline_mode<synchronous>, transform_indices = @transform_4, window_bounds = array<i64: 1, 128>}, {pipeline_mode = #tpu.pipeline_mode<synchronous>, transform_indices = @transform_5, window_bounds = array<i64: 128, 128>}, {pipeline_mode = #tpu.pipeline_mode<synchronous>, transform_indices = @transform_6, window_bounds = array<i64: 1, 128>}, {pipeline_mode = #tpu.pipeline_mode<synchronous>, transform_indices = @transform_7, window_bounds = array<i64: 32, 128>}]} {
    %c0 = arith.constant 0 : index
    %c0_0 = arith.constant 0 : index
    %0 = vector.load %arg1[%c0, %c0_0] : memref<32x128xf32, #tpu.memory_space<vmem>>, vector<32x128xf32>
    %c0_1 = arith.constant 0 : index
    %c0_2 = arith.constant 0 : index
    %1 = vector.load %arg2[%c0_1, %c0_2] : memref<128x128xf32, #tpu.memory_space<vmem>>, vector<128x128xf32>
    %cst = arith.constant dense<0.000000e+00> : vector<32x128xf32>
    %2 = tpu.matmul %0, %1, %cst {dimension_numbers = #tpu.dot_dimension_numbers<[1], [0], [0], [1], [0, 0, 1, 1], [], []>} : vector<32x128xf32>, vector<128x128xf32>, vector<32x128xf32> -> vector<32x128xf32>
    %c0_3 = arith.constant 0 : index
    %c0_4 = arith.constant 0 : index
    %3 = vector.load %arg3[%c0_3, %c0_4] : memref<1x128xf32, #tpu.memory_space<vmem>>, vector<1x128xf32>
    %4 = vector.broadcast %3 : vector<1x128xf32> to vector<32x128xf32>
    %5 = arith.addf %2, %4 : vector<32x128xf32>
    %cst_5 = arith.constant 0.000000e+00 : f32
    %6 = vector.broadcast %cst_5 : f32 to vector<32x128xf32>
    %7 = arith.maximumf %5, %6 : vector<32x128xf32>
    %c0_6 = arith.constant 0 : index
    %c0_7 = arith.constant 0 : index
    %8 = vector.load %arg4[%c0_6, %c0_7] : memref<128x128xf32, #tpu.memory_space<vmem>>, vector<128x128xf32>
    %cst_8 = arith.constant dense<0.000000e+00> : vector<32x128xf32>
    %9 = tpu.matmul %7, %8, %cst_8 {dimension_numbers = #tpu.dot_dimension_numbers<[1], [0], [0], [1], [0, 0, 1, 1], [], []>} : vector<32x128xf32>, vector<128x128xf32>, vector<32x128xf32> -> vector<32x128xf32>
    %c0_9 = arith.constant 0 : index
    %c0_10 = arith.constant 0 : index
    %10 = vector.load %arg5[%c0_9, %c0_10] : memref<1x128xf32, #tpu.memory_space<vmem>>, vector<1x128xf32>
    %11 = vector.broadcast %10 : vector<1x128xf32> to vector<32x128xf32>
    %12 = arith.addf %9, %11 : vector<32x128xf32>
    %cst_11 = arith.constant 0.000000e+00 : f32
    %13 = vector.broadcast %cst_11 : f32 to vector<32x128xf32>
    %14 = arith.maximumf %12, %13 : vector<32x128xf32>
    %c0_12 = arith.constant 0 : index
    %c0_13 = arith.constant 0 : index
    %15 = vector.load %arg6[%c0_12, %c0_13] : memref<128x128xf32, #tpu.memory_space<vmem>>, vector<128x128xf32>
    %cst_14 = arith.constant dense<0.000000e+00> : vector<32x128xf32>
    %16 = tpu.matmul %14, %15, %cst_14 {dimension_numbers = #tpu.dot_dimension_numbers<[1], [0], [0], [1], [0, 0, 1, 1], [], []>} : vector<32x128xf32>, vector<128x128xf32>, vector<32x128xf32> -> vector<32x128xf32>
    %c0_15 = arith.constant 0 : index
    %c0_16 = arith.constant 0 : index
    %17 = vector.load %arg7[%c0_15, %c0_16] : memref<1x128xf32, #tpu.memory_space<vmem>>, vector<1x128xf32>
    %18 = vector.broadcast %17 : vector<1x128xf32> to vector<32x128xf32>
    %19 = arith.addf %16, %18 : vector<32x128xf32>
    %c0_17 = arith.constant 0 : index
    %c0_18 = arith.constant 0 : index
    %20 = vector.load %arg8[%c0_17, %c0_18] : memref<32x128xf32, #tpu.memory_space<vmem>>, vector<32x128xf32>
    tpu.vector_store %arg8[%c0_17, %c0_18], %19 {strides = array<i32>} : memref<32x128xf32, #tpu.memory_space<vmem>>, vector<32x128xf32>,
    return
  }
  func.func @transform_0(%arg0: i32) -> (i32, i32) {
    %c0_i32 = arith.constant 0 : i32
    %c0_i32_0 = arith.constant 0 : i32
    %c0_i32_1 = arith.constant 0 : i32
    return %c0_i32, %c0_i32_0 : i32, i32
  }
  func.func @transform_1(%arg0: i32) -> (i32, i32) {
    %c0_i32 = arith.constant 0 : i32
    %c0_i32_0 = arith.constant 0 : i32
    %c0_i32_1 = arith.constant 0 : i32
    return %c0_i32, %c0_i32_0 : i32, i32
  }
  func.func @transform_2(%arg0: i32) -> (i32, i32) {
    %c0_i32 = arith.constant 0 : i32
    %c0_i32_0 = arith.constant 0 : i32
    %c0_i32_1 = arith.constant 0 : i32
    return %c0_i32, %c0_i32_0 : i32, i32
  }
  func.func @transform_3(%arg0: i32) -> (i32, i32) {
    %c0_i32 = arith.constant 0 : i32
    %c0_i32_0 = arith.constant 0 : i32
    %c0_i32_1 = arith.constant 0 : i32
    return %c0_i32, %c0_i32_0 : i32, i32
  }
  func.func @transform_4(%arg0: i32) -> (i32, i32) {
    %c0_i32 = arith.constant 0 : i32
    %c0_i32_0 = arith.constant 0 : i32
    %c0_i32_1 = arith.constant 0 : i32
    return %c0_i32, %c0_i32_0 : i32, i32
  }
  func.func @transform_5(%arg0: i32) -> (i32, i32) {
    %c0_i32 = arith.constant 0 : i32
    %c0_i32_0 = arith.constant 0 : i32
    %c0_i32_1 = arith.constant 0 : i32
    return %c0_i32, %c0_i32_0 : i32, i32
  }
  func.func @transform_6(%arg0: i32) -> (i32, i32) {
    %c0_i32 = arith.constant 0 : i32
    %c0_i32_0 = arith.constant 0 : i32
    %c0_i32_1 = arith.constant 0 : i32
    return %c0_i32, %c0_i32_0 : i32, i32
  }
  func.func @transform_7(%arg0: i32) -> (i32, i32) {
    %c0_i32 = arith.constant 0 : i32
    %c0_i32_0 = arith.constant 0 : i32
    %c0_i32_1 = arith.constant 0 : i32
    return %c0_i32, %c0_i32_0 : i32, i32
  }
}

</mosaic_0001>

<bundles_post_ra>
// kernel: _maml_forward_jit.1
= control target key start
LH: loop header
LB: loop body
LE: loop exit
PB: predicated region body
PF: predicated region fallthrough
CT: control target
= control target key end

     0   :  { %s876_s1 = inlined_call_operand.vmem [shape: f32[128,128], index: 1, kind: input, shape index: {}]   ;;  %s877_s0 = inlined_call_operand.vmem [shape: f32[32,128], index: 0, kind: input, shape index: {}]   ;;  %s878_s3 = inlined_call_operand.vmem [shape: f32[128,128], index: 3, kind: input, shape index: {}]   ;;  %s879_s5 = inlined_call_operand.vmem [shape: f32[128,128], index: 5, kind: input, shape index: {}]   ;;  %s880_s2 = inlined_call_operand.vmem [shape: f32[1,128], index: 2, kind: input, shape index: {}]   ;;  %s881_s4 = inlined_call_operand.vmem [shape: f32[1,128], index: 4, kind: input, shape index: {}]   ;;  %s882_s6 = inlined_call_operand.vmem [shape: f32[1,128], index: 6, kind: input, shape index: {}]   ;;  %s883_s7 = inlined_call_operand.vmem [shape: f32[32,128], index: 7, kind: output, shape index: {}]  }
   0x1   :  { %v30_v0 = vld [vmem:[%s876_s1] sm:$0xff]  ;;  %v31_v1 = vld [vmem:[%s876_s1 + $0x8] sm:$0xff]  ;;  %v32_v2 = vld [vmem:[%s876_s1 + $0x10] sm:$0xff] }
   0x2   :  { %v547_v3 = vpack.c.bf16 %v31_v1, %v30_v0  ;;  %v33_v4 = vld [vmem:[%s876_s1 + $0x18] sm:$0xff]  ;;  %v34_v6 = vld [vmem:[%s876_s1 + $0x20] sm:$0xff]  ;;  %v35_v7 = vld [vmem:[%s876_s1 + $0x28] sm:$0xff] }
   0x3   :  { %v551_v5 = vpack.c.bf16 %v33_v4, %v32_v2  ;;  %v555_v8 = vpack.c.bf16 %v35_v7, %v34_v6  ;;  %v26_v9 = vld [vmem:[%s877_s0] sm:$0xff]  ;;  %v36_v10 = vld [vmem:[%s876_s1 + $0x30] sm:$0xff]  ;;  %v37_v11 = vld [vmem:[%s876_s1 + $0x38] sm:$0xff] }
   0x4   :  { %548 = vmatprep.subr.bf16.mxu0 %v547_v3  ;;  %465 = vmatprep.mubr.f32.mxu0 %v26_v9  ;;  %v142_v12 = vld [vmem:[%s878_s3] sm:$0xff]  ;;  %v143_v13 = vld [vmem:[%s878_s3 + $0x8] sm:$0xff]  ;;  %v144_v14 = vld [vmem:[%s878_s3 + $0x10] sm:$0xff]  ;;  %v559_v18 = vpack.c.bf16 %v37_v11, %v36_v10 }
   0x5   :  { %550 = vmatpush3.bf16.msra.mxu0 %v547_v3  ;;  %v145_v15 = vld [vmem:[%s878_s3 + $0x18] sm:$0xff]  ;;  %v579_v16 = vpack.c.bf16 %v143_v13, %v142_v12  ;;  %v146_v19 = vld [vmem:[%s878_s3 + $0x20] sm:$0xff]  ;;  %v147_v20 = vld [vmem:[%s878_s3 + $0x28] sm:$0xff] }
   0x6   :  { %552 = vmatprep.subr.bf16.mxu0 %v551_v5  ;;  %v583_v17 = vpack.c.bf16 %v145_v15, %v144_v14  ;;  %v38_v21 = vld [vmem:[%s876_s1 + $0x40] sm:$0xff]  ;;  %v39_v22 = vld [vmem:[%s876_s1 + $0x48] sm:$0xff]  ;;  %v587_v23 = vpack.c.bf16 %v147_v20, %v146_v19  ;;  %v148_v25 = vld [vmem:[%s878_s3 + $0x30] sm:$0xff] }
   0x7   :  { %580 = vmatprep.subr.bf16.mxu1 %v579_v16  ;;  %v563_v24 = vpack.c.bf16 %v39_v22, %v38_v21  ;;  %v149_v26 = vld [vmem:[%s878_s3 + $0x38] sm:$0xff]  ;;  %v40_v27 = vld [vmem:[%s876_s1 + $0x50] sm:$0xff]  ;;  %v150_v31 = vld [vmem:[%s878_s3 + $0x40] sm:$0xff] }
   0x8   :  { %582 = vmatpush3.bf16.msra.mxu1 %v579_v16  ;;  %v41_v28 = vld [vmem:[%s876_s1 + $0x58] sm:$0xff]  ;;  %v591_v29 = vpack.c.bf16 %v149_v26, %v148_v25  ;;  %v151_v32 = vld [vmem:[%s878_s3 + $0x48] sm:$0xff]  ;;  %v42_v33 = vld [vmem:[%s876_s1 + $0x60] sm:$0xff] }
   0x9   :  { %554 = vmatpush3.bf16.msra.mxu0 %v551_v5  ;;  %584 = vmatprep.subr.bf16.mxu1 %v583_v17  ;;  %v567_v30 = vpack.c.bf16 %v41_v28, %v40_v27  ;;  %v43_v34 = vld [vmem:[%s876_s1 + $0x68] sm:$0xff]  ;;  %v595_v35 = vpack.c.bf16 %v151_v32, %v150_v31  ;;  %v152_v37 = vld [vmem:[%s878_s3 + $0x50] sm:$0xff]  ;;  %v153_v38 = vld [vmem:[%s878_s3 + $0x58] sm:$0xff] }
   0xa   :  { %556 = vmatprep.subr.bf16.mxu0 %v555_v8  ;;  %v571_v36 = vpack.c.bf16 %v43_v34, %v42_v33  ;;  %v44_v39 = vld [vmem:[%s876_s1 + $0x70] sm:$0xff]  ;;  %v45_v40 = vld [vmem:[%s876_s1 + $0x78] sm:$0xff]  ;;  %v599_v41 = vpack.c.bf16 %v153_v38, %v152_v37  ;;  %v154_v43 = vld [vmem:[%s878_s3 + $0x60] sm:$0xff] }
   0xb   :  { %v575_v42 = vpack.c.bf16 %v45_v40, %v44_v39  ;;  %v155_v44 = vld [vmem:[%s878_s3 + $0x68] sm:$0xff]  ;;  %v28_v47 = vld [vmem:[%s877_s0 + $0x10] sm:$0xff]  ;;  %v29_v48 = vld [vmem:[%s877_s0 + $0x18] sm:$0xff] }
   0xc   :  { %586 = vmatpush3.bf16.msra.mxu1 %v583_v17  ;;  %v603_v45 = vpack.c.bf16 %v155_v44, %v154_v43  ;;  %v27_v46 = vld [vmem:[%s877_s0 + $0x8] sm:$0xff]  ;;  %v156_v49 = vld [vmem:[%s878_s3 + $0x70] sm:$0xff]  ;;  %v157_v50 = vld [vmem:[%s878_s3 + $0x78] sm:$0xff] }
   0xd   :  { %558 = vmatpush3.bf16.msra.mxu0 %v555_v8  ;;  %588 = vmatprep.subr.bf16.mxu1 %v587_v23  ;;  %v607_v51 = vpack.c.bf16 %v157_v50, %v156_v49  ;;  %v254_v52 = vld [vmem:[%s879_s5] sm:$0xff]  ;;  %v255_v53 = vld [vmem:[%s879_s5 + $0x8] sm:$0xff]  ;;  %v256_v54 = vld [vmem:[%s879_s5 + $0x10] sm:$0xff] }
   0xe   :  { %560 = vmatprep.subr.bf16.mxu0 %v559_v18  ;;  %v611_v55 = vpack.c.bf16 %v255_v53, %v254_v52  ;;  %v257_v56 = vld [vmem:[%s879_s5 + $0x18] sm:$0xff]  ;;  %v258_v58 = vld [vmem:[%s879_s5 + $0x20] sm:$0xff]  ;;  %v259_v59 = vld [vmem:[%s879_s5 + $0x28] sm:$0xff] }
   0xf   :  { %v615_v57 = vpack.c.bf16 %v257_v56, %v256_v54  ;;  %v619_v60 = vpack.c.bf16 %v259_v59, %v258_v58  ;;  %v260_v61 = vld [vmem:[%s879_s5 + $0x30] sm:$0xff]  ;;  %v261_v62 = vld [vmem:[%s879_s5 + $0x38] sm:$0xff]  ;;  %v262_v0 = vld [vmem:[%s879_s5 + $0x40] sm:$0xff] }
  0x10   :  { %590 = vmatpush3.bf16.msra.mxu1 %v587_v23  ;;  %v623_v63 = vpack.c.bf16 %v261_v62, %v260_v61  ;;  %v263_v1 = vld [vmem:[%s879_s5 + $0x48] sm:$0xff]  ;;  %v264_v3 = vld [vmem:[%s879_s5 + $0x50] sm:$0xff]  ;;  %v265_v4 = vld [vmem:[%s879_s5 + $0x58] sm:$0xff] }
  0x11   :  { %562 = vmatpush3.bf16.msra.mxu0 %v559_v18  ;;  %592 = vmatprep.subr.bf16.mxu1 %v591_v29  ;;  %v627_v2 = vpack.c.bf16 %v263_v1, %v262_v0  ;;  %v631_v5 = vpack.c.bf16 %v265_v4, %v264_v3  ;;  %v266_v6 = vld [vmem:[%s879_s5 + $0x60] sm:$0xff]  ;;  %v267_v7 = vld [vmem:[%s879_s5 + $0x68] sm:$0xff]  ;;  %v268_v22 = vld [vmem:[%s879_s5 + $0x70] sm:$0xff] }
  0x12   :  { %564 = vmatprep.subr.bf16.mxu0 %v563_v24  ;;  %v635_v8 = vpack.c.bf16 %v267_v7, %v266_v6  ;;  %v370_v9 = vld [vmem:[%s880_s2] ss:$0 sm:$0xff]  ;;  %v269_v23 = vld [vmem:[%s879_s5 + $0x78] sm:$0xff] }
  0x13   :  { %v371_v25 = vld [vmem:[%s881_s4] ss:$0 sm:$0xff] }
  0x14   :  { %594 = vmatpush3.bf16.msra.mxu1 %v591_v29  ;;  %v372_v38 = vld [vmem:[%s882_s6] ss:$0 sm:$0xff] }
  0x15   :  { %566 = vmatpush3.bf16.msra.mxu0 %v563_v24  ;;  %596 = vmatprep.subr.bf16.mxu1 %v595_v35  ;;  %v639_v24 = vpack.c.bf16 %v269_v23, %v268_v22 }
  0x16   :  { %568 = vmatprep.subr.bf16.mxu0 %v567_v30 }
  0x18   :  { %598 = vmatpush3.bf16.msra.mxu1 %v595_v35 }
  0x19   :  { %570 = vmatpush3.bf16.msra.mxu0 %v567_v30  ;;  %600 = vmatprep.subr.bf16.mxu1 %v599_v41 }
  0x1a   :  { %572 = vmatprep.subr.bf16.mxu0 %v571_v36 }
  0x1c   :  { %602 = vmatpush3.bf16.msra.mxu1 %v599_v41 }
  0x1d   :  { %574 = vmatpush3.bf16.msra.mxu0 %v571_v36  ;;  %604 = vmatprep.subr.bf16.mxu1 %v603_v45 }
  0x1e   :  { %576 = vmatprep.subr.bf16.mxu0 %v575_v42 }
  0x20   :  { %606 = vmatpush3.bf16.msra.mxu1 %v603_v45 }
  0x21   :  { %578 = vmatpush3.bf16.msra.mxu0 %v575_v42  ;;  %608 = vmatprep.subr.bf16.mxu1 %v607_v51 }
  0x22   :  { %612 = vmatprep.subr.bf16.mxu0 %v611_v55 }
  0x24   :  { %466 = vmatmul.mubr.f32.vlgmr.msra.gmra.mrb[0].mxu0 %v27_v46  ;;  %610 = vmatpush3.bf16.msra.mxu1 %v607_v51 }
  0x25   :  { %468 = vmatprep.mubr.f32.mxu0 %v28_v47  ;;  %643 = vmatprep.subr.bf16.mxu1 %v611_v55 }
  0x26   :  { %614 = vmatpush3.bf16.msra.mxu0 %v611_v55 }
  0x27   :  { %616 = vmatprep.subr.bf16.mxu0 %v615_v57 }
  0x28   :  { %469 = vmatmul.mubr.f32.gmra.mrb[2].mxu0 %v29_v48 }
  0x2a   :  { %618 = vmatpush3.bf16.msra.mxu0 %v615_v57 }
  0x2b   :  { %620 = vmatprep.subr.bf16.mxu0 %v619_v60 }
  0x2e   :  { %622 = vmatpush3.bf16.msra.mxu0 %v619_v60 }
  0x2f   :  { %624 = vmatprep.subr.bf16.mxu0 %v623_v63 }
  0x32   :  { %626 = vmatpush3.bf16.msra.mxu0 %v623_v63 }
  0x33   :  { %628 = vmatprep.subr.bf16.mxu0 %v627_v2 }
  0x36   :  { %630 = vmatpush3.bf16.msra.mxu0 %v627_v2 }
  0x37   :  { %632 = vmatprep.subr.bf16.mxu0 %v631_v5 }
  0x3a   :  { %634 = vmatpush3.bf16.msra.mxu0 %v631_v5 }
  0x3b   :  { %636 = vmatprep.subr.bf16.mxu0 %v635_v8 }
  0x3e   :  { %638 = vmatpush3.bf16.msra.mxu0 %v635_v8 }
  0x3f   :  { %640 = vmatprep.subr.bf16.mxu0 %v639_v24 }
  0x42   :  { %642 = vmatpush3.bf16.msra.mxu0 %v639_v24 }
  0xf7   :  { %v467_v10 = vpop.f32.mrb[0].mxu0 }
  0xf8   :  { %v125_v11 = vadd.f32 %v467_v10, %v370_v9  ;;  %v119_v12 = vpop.f32.mrb[1].mxu0 }
  0xf9   :  { %v120_v13 = vadd.f32 %v370_v9, %v119_v12 }
  0xfa   :  { %v139_v16 = vmax.f32 %v125_v11, 0.0 }
  0xfb   :  { %v470_v14 = vpop.f32.mrb[2].mxu0  ;;  %v138_v15 = vmax.f32 %v120_v13, 0.0 }
  0xfc   :  { %v135_v17 = vadd.f32 %v470_v14, %v370_v9  ;;  %v129_v18 = vpop.f32.mrb[3].mxu0 }
  0xfd   :  { %v130_v19 = vadd.f32 %v370_v9, %v129_v18  ;;  %503 = vmatprep.mubr.f32.mxu1 %v138_v15 }
  0xfe   :  { %504 = vmatmul.mubr.f32.vlgmr.msra.gmra.mrb[0].mxu1 %v139_v16  ;;  %v141_v21 = vmax.f32 %v135_v17, 0.0 }
  0xff   :  { %v140_v20 = vmax.f32 %v130_v19, 0.0  ;;  %651 = vmatpush3.bf16.msra.mxu1 %v611_v55 }
 0x100   :  { %644 = vmatprep.subr.bf16.mxu1 %v615_v57 }
 0x101   :  { %506 = vmatprep.mubr.f32.mxu1 %v140_v20 }
 0x102   :  { %507 = vmatmul.mubr.f32.gmra.mrb[2].mxu1 %v141_v21 }
 0x103   :  { %652 = vmatpush3.bf16.msra.mxu1 %v615_v57 }
 0x104   :  { %645 = vmatprep.subr.bf16.mxu1 %v619_v60 }
 0x107   :  { %653 = vmatpush3.bf16.msra.mxu1 %v619_v60 }
 0x108   :  { %646 = vmatprep.subr.bf16.mxu1 %v623_v63 }
 0x10b   :  { %654 = vmatpush3.bf16.msra.mxu1 %v623_v63 }
 0x10c   :  { %647 = vmatprep.subr.bf16.mxu1 %v627_v2 }
 0x10f   :  { %655 = vmatpush3.bf16.msra.mxu1 %v627_v2 }
 0x110   :  { %648 = vmatprep.subr.bf16.mxu1 %v631_v5 }
 0x113   :  { %656 = vmatpush3.bf16.msra.mxu1 %v631_v5 }
 0x114   :  { %649 = vmatprep.subr.bf16.mxu1 %v635_v8 }
 0x117   :  { %657 = vmatpush3.bf16.msra.mxu1 %v635_v8 }
 0x118   :  { %650 = vmatprep.subr.bf16.mxu1 %v639_v24 }
 0x11b   :  { %658 = vmatpush3.bf16.msra.mxu1 %v639_v24 }
 0x1d1   :  { %v505_v26 = vpop.f32.mrb[0].mxu1 }
 0x1d2   :  { %v237_v27 = vadd.f32 %v505_v26, %v371_v25  ;;  %v231_v28 = vpop.f32.mrb[1].mxu1 }
 0x1d3   :  { %v232_v29 = vadd.f32 %v371_v25, %v231_v28 }
 0x1d4   :  { %v251_v32 = vmax.f32 %v237_v27, 0.0 }
 0x1d5   :  { %v250_v30 = vmax.f32 %v232_v29, 0.0  ;;  %v508_v31 = vpop.f32.mrb[2].mxu1 }
 0x1d6   :  { %v247_v33 = vadd.f32 %v508_v31, %v371_v25  ;;  %v241_v34 = vpop.f32.mrb[3].mxu1 }
 0x1d7   :  { %v242_v35 = vadd.f32 %v371_v25, %v241_v34  ;;  %541 = vmatprep.mubr.f32.mxu0 %v250_v30 }
 0x1d8   :  { %542 = vmatmul.mubr.f32.vlgmr.msra.gmra.mrb[4].mxu0 %v251_v32  ;;  %v253_v37 = vmax.f32 %v247_v33, 0.0 }
 0x1d9   :  { %v252_v36 = vmax.f32 %v242_v35, 0.0 }
 0x1db   :  { %544 = vmatprep.mubr.f32.mxu1 %v252_v36 }
 0x1dc   :  { %545 = vmatmul.mubr.f32.vlgmr.msra.gmra.mrb[4].mxu1 %v253_v37 }
 0x2ab   :  { %v543_v39 = vpop.f32.mrb[4].mxu0 }
 0x2ac   :  { %v349_v40 = vadd.f32 %v543_v39, %v372_v38  ;;  %v343_v41 = vpop.f32.mrb[5].mxu0 }
 0x2ad   :  { %v344_v42 = vadd.f32 %v372_v38, %v343_v41 }
 0x2ae   :  { %363 = vst [vmem:[%s883_s7 + $0x8] sm:$0xff] %v349_v40 }
 0x2af   :  { %362 = vst [vmem:[%s883_s7] sm:$0xff] %v344_v42  ;;  %v546_v43 = vpop.f32.mrb[4].mxu1 }
 0x2b0   :  { %v359_v44 = vadd.f32 %v546_v43, %v372_v38  ;;  %v353_v45 = vpop.f32.mrb[5].mxu1 }
 0x2b1   :  { %v354_v46 = vadd.f32 %v372_v38, %v353_v45 }
 0x2b2   :  { %365 = vst [vmem:[%s883_s7 + $0x18] sm:$0xff] %v359_v44 }
 0x2b3   :  { %364 = vst [vmem:[%s883_s7 + $0x10] sm:$0xff] %v354_v46 }

</bundles_post_ra>
